<compile_context>
chip_gen: v6e
topology: v6e:2x2x1
jax: 0.10.0
libtpu: 0.0.40
codegen_flags: <defaults>
</compile_context>

<pallas_src>
import functools

import jax
import jax.numpy as jnp
from jax.experimental import pallas as pl
from jax.experimental.pallas import tpu as pltpu


def _round_up(n: int, m: int) -> int:
    return ((n + m - 1) // m) * m


def _mlp_kernel(x_ref, w1_ref, b1_ref, w2_ref, b2_ref, w3_ref, b3_ref, oT_ref):
    # x  : [TB, 15] (caller dtype; f32 or bf16)
    # w1 : [10, 15] bf16   b1 : [10, 1] f32
    # w2 : [ 5, 10] bf16   b2 : [ 5, 1] f32
    # w3 : [ 3,  5] bf16   b3 : [ 3, 1] f32
    # oT : [ 3, TB] f32    (feature-major, lane-dense output block)

    # In-kernel relayout to feature-major: batch -> 128-lane axis. XLU work,
    # hidden under the x DMA (the kernel is HBM-bound).
    xT = jnp.transpose(x_ref[...]).astype(jnp.bfloat16)          # [15, TB]

    h1 = jnp.dot(w1_ref[...], xT, preferred_element_type=jnp.float32) + b1_ref[...]
    h1 = jnp.maximum(h1, 0.0)                                     # [10, TB] f32

    h2 = jnp.dot(w2_ref[...], h1.astype(jnp.bfloat16),
                 preferred_element_type=jnp.float32) + b2_ref[...]
    h2 = jnp.maximum(h2, 0.0)                                     # [ 5, TB] f32

    h3 = jnp.dot(w3_ref[...], h2.astype(jnp.bfloat16),
                 preferred_element_type=jnp.float32) + b3_ref[...]
    oT_ref[...] = h3.astype(oT_ref.dtype)                         # [ 3, TB]


@functools.partial(jax.jit, static_argnames=("tb",))
def mlp_forward(x, params, *, tb=16384):
    """x: [B, 15] (f32 or bf16) -> [B, 3] f32."""
    w1, b1, w2, b2, w3, b3 = params
    B, feat = x.shape
    out_dim = w3.shape[0]

    # Batch tile: multiple of 128 (lane width), capped by `tb`, and capped at
    # ~half the (128-rounded) batch so large batches always give >=2 grid
    # steps (keeps both TensorCores busy on v7x).
    b128 = _round_up(max(B, 1), 128)
    TB = min(tb, _round_up((b128 + 1) // 2, 128))
    grid = (pl.cdiv(B, TB),)

    # Weights feed the MXU in bf16 (f32 accumulation); biases stay f32.
    w1b = w1.astype(jnp.bfloat16)
    w2b = w2.astype(jnp.bfloat16)
    w3b = w3.astype(jnp.bfloat16)

    # Whole-array blocks with constant index_map -> DMA'd once, VMEM-resident.
    const = lambda a: pl.BlockSpec(a.shape, lambda i: (0, 0))

    # Advisory cost for XLA's scheduler: ~430*B FLOPs, ~(60+12)*B bytes.
    flops = 2 * B * sum(int(w.shape[0]) * int(w.shape[1]) for w in (w1, w2, w3))
    weight_bytes = sum(int(w.size) * 2 for w in (w1b, w2b, w3b)) + \
        sum(int(b.size) * 4 for b in (b1, b2, b3))
    bytes_accessed = B * feat * x.dtype.itemsize + B * out_dim * 4 + weight_bytes
    cost = pl.CostEstimate(flops=flops, transcendentals=0,
                           bytes_accessed=int(bytes_accessed))

    oT = pl.pallas_call(
        _mlp_kernel,
        out_shape=jax.ShapeDtypeStruct((out_dim, B), jnp.float32),
        grid=grid,
        in_specs=[
            # Natural (TB, 15) batch blocks of x, auto double-buffered;
            # ragged last block handled by Pallas (masked edge).
            pl.BlockSpec((TB, feat), lambda i: (i, 0)),
            const(w1b), const(b1),
            const(w2b), const(b2),
            const(w3b), const(b3),
        ],
        # Feature-major, lane-dense output block.
        out_specs=pl.BlockSpec((out_dim, TB), lambda i: (0, i)),
        compiler_params=pltpu.CompilerParams(
            dimension_semantics=("parallel",),
            # (TB,15) f32 block is lane-padded to 128 in VMEM (~512*TB bytes);
            # 2 buffers + intermediates ~= 24 MiB at TB=16384. 40 MiB keeps
            # headroom and fits every generation (v7x physical VMEM = 64 MiB).
            vmem_limit_bytes=40 * 1024 * 1024,
        ),
        cost_estimate=cost,
    )(x, w1b, b1, w2b, b2, w3b, b3)

    return oT.T                                                   # [B, 3]


def init_params(key, layers=(15, 10, 5), out_dim=3):
    """PyTorch-style nn.Linear init: U(-1/sqrt(fan_in), 1/sqrt(fan_in)).

    Weights in torch layout [out, in]; biases as [out, 1] columns so the
    kernel's feature-major matmuls (y = W @ x + b) use them directly.
    """
    dims = list(layers) + [out_dim]
    params = []
    for fan_in, fan_out in zip(dims[:-1], dims[1:]):
        key, kw, kb = jax.random.split(key, 3)
        bound = 1.0 / (fan_in ** 0.5)
        w = jax.random.uniform(kw, (fan_out, fan_in), jnp.float32, -bound, bound)
        b = jax.random.uniform(kb, (fan_out, 1), jnp.float32, -bound, bound)
        params.extend([w, b])
    return tuple(params)


def reference_forward(x, params):
    w1, b1, w2, b2, w3, b3 = params
    h1 = jnp.maximum(x @ w1.T + b1.T, 0.0)
    h2 = jnp.maximum(h1 @ w2.T + b2.T, 0.0)
    return h2 @ w3.T + b3.T


if __name__ == "__main__":
    key = jax.random.PRNGKey(0)
    key, kx1, kx2, kx3 = jax.random.split(key, 4)
    params = init_params(key)

    # Small batch (module's typical use): single, fully-ragged block.
    x_small = jax.random.normal(kx1, (8, 15), jnp.float32)
    out_small = jax.block_until_ready(mlp_forward(x_small, params))
    ref_small = reference_forward(x_small, params)
    assert out_small.shape == (8, 3), out_small.shape
    assert jnp.allclose(out_small, ref_small, atol=5e-2, rtol=5e-2), "mismatch (small)"

    # Batch not a multiple of the tile with a forced small tile: exercises a
    # 3-step "parallel" batch grid plus a ragged last block (no padding pass).
    x_mid = jax.random.normal(kx2, (300, 15), jnp.float32)
    out_mid = jax.block_until_ready(mlp_forward(x_mid, params, tb=128))
    ref_mid = reference_forward(x_mid, params)
    assert out_mid.shape == (300, 3), out_mid.shape
    assert jnp.allclose(out_mid, ref_mid, atol=5e-2, rtol=5e-2), "mismatch (mid)"

    # Default tile: TB auto-caps to half the batch -> 2 grid steps (both
    # TensorCores on v7x), second step ragged.
    x_big = jax.random.normal(kx3, (1000, 15), jnp.float32)
    out_big = jax.block_until_ready(mlp_forward(x_big, params))
    ref_big = reference_forward(x_big, params)
    assert out_big.shape == (1000, 3), out_big.shape
    assert jnp.allclose(out_big, ref_big, atol=5e-2, rtol=5e-2), "mismatch (big)"

    print("KERNEL_OK")
</pallas_src>

<mosaic_0001>
module attributes {stable_mosaic.version = 11 : i64} {
  func.func @_mlp_kernel(%arg0: i32, %arg1: memref<128x15xf32, #tpu.memory_space<vmem>>, %arg2: memref<10x15xbf16, #tpu.memory_space<vmem>>, %arg3: memref<10x1xf32, #tpu.memory_space<vmem>>, %arg4: memref<5x10xbf16, #tpu.memory_space<vmem>>, %arg5: memref<5x1xf32, #tpu.memory_space<vmem>>, %arg6: memref<3x5xbf16, #tpu.memory_space<vmem>>, %arg7: memref<3x1xf32, #tpu.memory_space<vmem>>, %arg8: memref<3x128xf32, #tpu.memory_space<vmem>>) attributes {dimension_semantics = [#tpu.dimension_semantics<parallel>], iteration_bounds = array<i64: 1>, scalar_prefetch = 0 : i64, scratch_operands = 0 : i64, tpu.core_type = #tpu.core_type<tc>, window_params = [{transform_indices = @transform_0, window_bounds = array<i64: 128, 15>}, {pipeline_mode = #tpu.pipeline_mode<synchronous>, transform_indices = @transform_1, window_bounds = array<i64: 10, 15>}, {pipeline_mode = #tpu.pipeline_mode<synchronous>, transform_indices = @transform_2, window_bounds = array<i64: 10, 1>}, {pipeline_mode = #tpu.pipeline_mode<synchronous>, transform_indices = @transform_3, window_bounds = array<i64: 5, 10>}, {pipeline_mode = #tpu.pipeline_mode<synchronous>, transform_indices = @transform_4, window_bounds = array<i64: 5, 1>}, {pipeline_mode = #tpu.pipeline_mode<synchronous>, transform_indices = @transform_5, window_bounds = array<i64: 3, 5>}, {pipeline_mode = #tpu.pipeline_mode<synchronous>, transform_indices = @transform_6, window_bounds = array<i64: 3, 1>}, {transform_indices = @transform_7, window_bounds = array<i64: 3, 128>}]} {
    %c0 = arith.constant 0 : index
    %c0_0 = arith.constant 0 : index
    %0 = vector.load %arg1[%c0, %c0_0] : memref<128x15xf32, #tpu.memory_space<vmem>>, vector<128x15xf32>
    %1 = tpu.transpose %0, [1, 0] : vector<128x15xf32> -> vector<15x128xf32>
    %2 = arith.truncf %1 : vector<15x128xf32> to vector<15x128xbf16>
    %c0_1 = arith.constant 0 : index
    %c0_2 = arith.constant 0 : index
    %3 = vector.load %arg2[%c0_1, %c0_2] : memref<10x15xbf16, #tpu.memory_space<vmem>>, vector<10x15xbf16>
    %cst = arith.constant dense<0.000000e+00> : vector<10x128xf32>
    %4 = tpu.matmul %3, %2, %cst {dimension_numbers = #tpu.dot_dimension_numbers<[1], [0], [0], [1], [0, 0, 1, 1], [], []>} : vector<10x15xbf16>, vector<15x128xbf16>, vector<10x128xf32> -> vector<10x128xf32>
    %c0_3 = arith.constant 0 : index
    %c0_4 = arith.constant 0 : index
    %5 = vector.load %arg3[%c0_3, %c0_4] : memref<10x1xf32, #tpu.memory_space<vmem>>, vector<10x1xf32>
    %6 = vector.broadcast %5 : vector<10x1xf32> to vector<10x128xf32>
    %7 = arith.addf %4, %6 : vector<10x128xf32>
    %cst_5 = arith.constant 0.000000e+00 : f32
    %8 = vector.broadcast %cst_5 : f32 to vector<10x128xf32>
    %9 = arith.maximumf %7, %8 : vector<10x128xf32>
    %c0_6 = arith.constant 0 : index
    %c0_7 = arith.constant 0 : index
    %10 = vector.load %arg4[%c0_6, %c0_7] : memref<5x10xbf16, #tpu.memory_space<vmem>>, vector<5x10xbf16>
    %11 = arith.truncf %9 : vector<10x128xf32> to vector<10x128xbf16>
    %cst_8 = arith.constant dense<0.000000e+00> : vector<5x128xf32>
    %12 = tpu.matmul %10, %11, %cst_8 {dimension_numbers = #tpu.dot_dimension_numbers<[1], [0], [0], [1], [0, 0, 1, 1], [], []>} : vector<5x10xbf16>, vector<10x128xbf16>, vector<5x128xf32> -> vector<5x128xf32>
    %c0_9 = arith.constant 0 : index
    %c0_10 = arith.constant 0 : index
    %13 = vector.load %arg5[%c0_9, %c0_10] : memref<5x1xf32, #tpu.memory_space<vmem>>, vector<5x1xf32>
    %14 = vector.broadcast %13 : vector<5x1xf32> to vector<5x128xf32>
    %15 = arith.addf %12, %14 : vector<5x128xf32>
    %cst_11 = arith.constant 0.000000e+00 : f32
    %16 = vector.broadcast %cst_11 : f32 to vector<5x128xf32>
    %17 = arith.maximumf %15, %16 : vector<5x128xf32>
    %c0_12 = arith.constant 0 : index
    %c0_13 = arith.constant 0 : index
    %18 = vector.load %arg6[%c0_12, %c0_13] : memref<3x5xbf16, #tpu.memory_space<vmem>>, vector<3x5xbf16>
    %19 = arith.truncf %17 : vector<5x128xf32> to vector<5x128xbf16>
    %cst_14 = arith.constant dense<0.000000e+00> : vector<3x128xf32>
    %20 = tpu.matmul %18, %19, %cst_14 {dimension_numbers = #tpu.dot_dimension_numbers<[1], [0], [0], [1], [0, 0, 1, 1], [], []>} : vector<3x5xbf16>, vector<5x128xbf16>, vector<3x128xf32> -> vector<3x128xf32>
    %c0_15 = arith.constant 0 : index
    %c0_16 = arith.constant 0 : index
    %21 = vector.load %arg7[%c0_15, %c0_16] : memref<3x1xf32, #tpu.memory_space<vmem>>, vector<3x1xf32>
    %22 = vector.broadcast %21 : vector<3x1xf32> to vector<3x128xf32>
    %23 = arith.addf %20, %22 : vector<3x128xf32>
    %c0_17 = arith.constant 0 : index
    %c0_18 = arith.constant 0 : index
    %24 = vector.load %arg8[%c0_17, %c0_18] : memref<3x128xf32, #tpu.memory_space<vmem>>, vector<3x128xf32>
    tpu.vector_store %arg8[%c0_17, %c0_18], %23 {strides = array<i32>} : memref<3x128xf32, #tpu.memory_space<vmem>>, vector<3x128xf32>,
    return
  }
  func.func @transform_0(%arg0: i32) -> (i32, i32) {
    %c0_i32 = arith.constant 0 : i32
    %c0_i32_0 = arith.constant 0 : i32
    return %arg0, %c0_i32 : i32, i32
  }
  func.func @transform_1(%arg0: i32) -> (i32, i32) {
    %c0_i32 = arith.constant 0 : i32
    %c0_i32_0 = arith.constant 0 : i32
    %c0_i32_1 = arith.constant 0 : i32
    return %c0_i32, %c0_i32_0 : i32, i32
  }
  func.func @transform_2(%arg0: i32) -> (i32, i32) {
    %c0_i32 = arith.constant 0 : i32
    %c0_i32_0 = arith.constant 0 : i32
    %c0_i32_1 = arith.constant 0 : i32
    return %c0_i32, %c0_i32_0 : i32, i32
  }
  func.func @transform_3(%arg0: i32) -> (i32, i32) {
    %c0_i32 = arith.constant 0 : i32
    %c0_i32_0 = arith.constant 0 : i32
    %c0_i32_1 = arith.constant 0 : i32
    return %c0_i32, %c0_i32_0 : i32, i32
  }
  func.func @transform_4(%arg0: i32) -> (i32, i32) {
    %c0_i32 = arith.constant 0 : i32
    %c0_i32_0 = arith.constant 0 : i32
    %c0_i32_1 = arith.constant 0 : i32
    return %c0_i32, %c0_i32_0 : i32, i32
  }
  func.func @transform_5(%arg0: i32) -> (i32, i32) {
    %c0_i32 = arith.constant 0 : i32
    %c0_i32_0 = arith.constant 0 : i32
    %c0_i32_1 = arith.constant 0 : i32
    return %c0_i32, %c0_i32_0 : i32, i32
  }
  func.func @transform_6(%arg0: i32) -> (i32, i32) {
    %c0_i32 = arith.constant 0 : i32
    %c0_i32_0 = arith.constant 0 : i32
    %c0_i32_1 = arith.constant 0 : i32
    return %c0_i32, %c0_i32_0 : i32, i32
  }
  func.func @transform_7(%arg0: i32) -> (i32, i32) {
    %c0_i32 = arith.constant 0 : i32
    %c0_i32_0 = arith.constant 0 : i32
    return %c0_i32, %arg0 : i32, i32
  }
}

</mosaic_0001>

<bundles_post_ra>
// kernel: mlp_forward.1
= control target key start
LH: loop header
LB: loop body
LE: loop exit
PB: predicated region body
PF: predicated region fallthrough
CT: control target
= control target key end

     0   :  { %v339_v2 = vmov 0.0   ;;  %s459_s0 = inlined_call_operand.vmem [shape: f32[8,15], index: 0, kind: input, shape index: {}]   ;;  %s460_s1 = inlined_call_operand.vmem [shape: bf16[10,15], index: 1, kind: input, shape index: {}]   ;;  %s461_s2 = inlined_call_operand.vmem [shape: f32[10,1], index: 2, kind: input, shape index: {}]   ;;  %s462_s3 = inlined_call_operand.vmem [shape: bf16[5,10], index: 3, kind: input, shape index: {}]   ;;  %s463_s4 = inlined_call_operand.vmem [shape: f32[5,1], index: 4, kind: input, shape index: {}]   ;;  %s464_s5 = inlined_call_operand.vmem [shape: bf16[3,5], index: 5, kind: input, shape index: {}]   ;;  %s465_s6 = inlined_call_operand.vmem [shape: f32[3,1], index: 6, kind: input, shape index: {}]   ;;  %s466_s7 = inlined_call_operand.hbm [shape: f32[3,8], index: 7, kind: output, shape index: {}]  }
   0x1   :  { %v28_v0 = vld [vmem:[%s459_s0] sm:$0xff]  ;;  %v29_v1 = vld [vmem:[%s459_s0 + $0x8] sm:$0xff]  ;;  %291 = vmatprep.subr.bf16.mxu0 %v339_v2  ;;  %297 = vmatprep.subr.bf16.mxu1 %v339_v2  ;;  %v30_v3 = vld [vmem:[%s459_s0 + $0x10] sm:$0xff] }
   0x2   :  { %44 = vxpose.xlu0.b32.start [1/16] (narrow) %v28_v0, 16 }
   0x6   :  { %45 = vxpose.xlu0.b32.cont [2/16] (narrow) %v29_v1, 16 }
   0x7   :  { %12 = vsyncpa [#allocation3], 0  ;;  %vm340_vm0 = vmmov 0   ;;  %v79_v4 = vld [vmem:[%s461_s2] sm:$0xff]  ;;  %v31_v5 = vld [vmem:[%s459_s0 + $0x18] sm:$0xff]  ;;  %v341_v6 = vmov 0  }
   0x8   :  { %293 = vmatprep.mubr.msk.bf16.mxu0 %vm340_vm0, %v339_v2  ;;  %299 = vmatprep.mubr.msk.bf16.mxu1 %vm340_vm0, %v339_v2  ;;  %v80_v7 = vld [vmem:[%s461_s2 + $0x8] sm:$0x3]  ;;  %v32_v8 = vld [vmem:[%s459_s0 + $0x20] sm:$0xff]  ;;  %v34_v12 = vld [vmem:[%s459_s0 + $0x30] sm:$0xff]  ;;  %vm100_vm1 = vcmask 1046528   ;;  %vm101_vm2 = vcmask 1047552  }
   0x9   :  { %314 = vset.pattern.permute.xlu1 %v341_v6  ;;  %v152_v9 = vld [vmem:[%s463_s4] sm:$0x1f]  ;;  %v33_v10 = vld [vmem:[%s459_s0 + $0x28] sm:$0xff]  ;;  %v35_v13 = vld [vmem:[%s459_s0 + $0x38] sm:$0xff]  ;;  %v342_v23 = vmov 65535   ;;  %vm96_vm3 = vcmask 121856  }
   0xa   :  { %46 = vxpose.xlu0.b32.cont [3/16] (narrow) %v30_v3, 16  ;;  %83 = vperm.xlu1 %314, %v79_v4   ;;  %v209_v11 = vld [vmem:[%s465_s6] sm:$0x7]  ;;  %v37_v15 = vld [vmem:[%s459_s0 + $0x48] sm:$0xff]  ;;  %v38_v16 = vld [vmem:[%s459_s0 + $0x50] sm:$0xff]  ;;  %v102_v24 = vsel %vm100_vm1, 4294967295, %v342_v23 }
   0xb   :  { %v36_v14 = vld [vmem:[%s459_s0 + $0x40] sm:$0xff]  ;;  %v39_v17 = vld [vmem:[%s459_s0 + $0x58] sm:$0xff]  ;;  %v41_v19 = vld [vmem:[%s459_s0 + $0x68] sm:$0xff]  ;;  %v103_v26 = vsel %vm101_vm2, %v102_v24, 0  ;;  %vm162_vm4 = vcmask 1044480   ;;  %vm158_vm5 = vcmask 80896  }
   0xc   :  { %v40_v18 = vld [vmem:[%s459_s0 + $0x60] sm:$0xff]  ;;  %v42_v20 = vld [vmem:[%s459_s0 + $0x70] sm:$0xff]  ;;  %v43_v21 = vld [vmem:[%s459_s0 + $0x78] sm:$0xff]  ;;  %vm219_vm6 = vcmask 1041408   ;;  %vm220_vm7 = vcmask 1042432   ;;  %vm215_vm8 = vcmask 39936  }
   0xd   :  { %v316_v29 = vld [vmem:[%s460_s1] sm:$0x1f]   ;;  %v221_v46 = vsel %vm219_vm6, 4294967295, %v342_v23 }
   0xe   :  { %47 = vxpose.xlu0.b32.cont [4/16] (narrow) %v31_v5, 16  ;;  %88 = vperm.xlu1 %314, %v80_v7   ;;  %v150_v42 = vld [vmem:[%s462_s3] sm:$0x7]  ;;  %v222_v49 = vsel %vm220_vm7, %v221_v46, 0  ;;  %s343_s3 = smov [#allocation2]  }
   0xf   :  { %v207_v54 = vld [vmem:[%s464_s5] sm:$0x3]  ;;  %s273_s19 = sshll.u32 %s343_s3, 4  ;;  %s274_s19 = int_to_ptr.vmem [resolvable:$true] %s273_s19 }
  0x10   :  { %s317_s20 = scalar_lea.vmem %s274_s19, 64  ;;  %p322_p1 = scmp.lt.s32.totalorder %s274_s19, %s274_s19 }
  0x11   :  { %p318_p0 = scmp.ne.s32.totalorder %s274_s19, %s317_s20  ;;  %p323_p2 = scmp.lt.s32.totalorder %s317_s20, %s317_s20 }
  0x12   :  { %48 = vxpose.xlu0.b32.cont [5/16] (narrow) %v32_v8, 16  ;;  %155 = vperm.xlu1 %314, %v152_v9  }
  0x13   :  { %p324_p3 = por %p323_p2, %p322_p1 }
  0x15   :  { %p325_p4 = pnand %p324_p3, %p318_p0 }
  0x16   :  { %49 = vxpose.xlu0.b32.cont [6/16] (narrow) %v33_v10, 16  ;;  %212 = vperm.xlu1 %314, %v209_v11  }
  0x1a   :  { %50 = vxpose.xlu0.b32.cont [7/16] (narrow) %v34_v12, 16 }
  0x1e   :  { %51 = vxpose.xlu0.b32.cont [8/16] (narrow) %v35_v13, 16 }
  0x22   :  { %52 = vxpose.xlu0.b32.cont [9/16] (narrow) %v36_v14, 16 }
  0x26   :  { %53 = vxpose.xlu0.b32.cont [10/16] (narrow) %v37_v15, 16 }
  0x2a   :  { %54 = vxpose.xlu0.b32.cont [11/16] (narrow) %v38_v16, 16 }
  0x2e   :  { %55 = vxpose.xlu0.b32.cont [12/16] (narrow) %v39_v17, 16 }
  0x32   :  { %56 = vxpose.xlu0.b32.cont [13/16] (narrow) %v40_v18, 16 }
  0x36   :  { %57 = vxpose.xlu0.b32.cont [14/16] (narrow) %v41_v19, 16 }
  0x3a   :  { %58 = vxpose.xlu0.b32.cont [15/16] (narrow) %v42_v20, 16 }
  0x3e   :  { %59 = vxpose.xlu0.b32.end [16/16] (narrow) %v43_v21, 16 }
  0x67   :  { %315 = vset.pattern.permute.xlu0 %v341_v6 }
  0x7e   :  { %v60_v22 = vpop.trf.xlu0 }
  0x82   :  { %v61_v25 = vpop.trf.xlu0 }
  0x83   :  { %v76_v27 = vpack.c.bf16 %v61_v25, %v60_v22 }
  0x85   :  { %v105_v28 = vand.u32 %v103_v26, %v76_v27  ;;  %v84_v30 = vpop.permute.xlu1 %83 }
  0x87   :  { %292 = vmatpush3.bf16.msra.mxu0 %v105_v28 }
  0x88   :  { %303 = vmatprep.subr.bf16.mxu0 %v339_v2 }
  0x89   :  { %v89_v34 = vpop.permute.xlu1 %88 }
  0x8a   :  { %294 = vmatmul.mubr.msk.bf16.vlgmr.msra.gmra.mxu0 %vm96_vm3, %v316_v29 }
  0x8b   :  { %305 = vmatprep.mubr.msk.bf16.mxu0 %vm340_vm0, %v339_v2 }
  0x8d   :  { %v156_v43 = vpop.permute.xlu1 %155 }
  0x91   :  { %v213_v55 = vpop.permute.xlu1 %212 }
 0x14a   :  { %v141_v31 = vpop.f32.mrf.mxu0 }
 0x14b   :  { %v142_v33 = vadd.f32 %v141_v31, %v84_v30 }
 0x14c   :  { %v295_v32 = vpop.f32.mrf.mxu0 }
 0x14d   :  { %v148_v38 = vmax.f32 %v142_v33, 0.0 }
 0x14e   :  { %v144_v35 = vpop.f32.mrf.mxu0 }
 0x14f   :  { %v145_v36 = vadd.f32 %v144_v35, %v89_v34 }
 0x150   :  { %v296_v37 = vpop.f32.mrf.mxu0 }
 0x151   :  { %v149_v39 = vmax.f32 %v145_v36, 0.0 }
 0x153   :  { %v151_v40 = vpack.c.bf16 %v149_v39, %v148_v38 }
 0x155   :  { %v164_v41 = vsel %vm162_vm4, %v151_v40, 0 }
 0x156   :  { %298 = vmatpush3.bf16.msra.mxu1 %v164_v41 }
 0x159   :  { %300 = vmatmul.mubr.msk.bf16.vlgmr.msra.gmra.mxu1 %vm158_vm5, %v150_v42 }
 0x219   :  { %v200_v44 = vpop.f32.mrf.mxu1 }
 0x21a   :  { %v201_v45 = vadd.f32 %v200_v44, %v156_v43 }
 0x21b   :  { %v301_v47 = vpop.f32.mrf.mxu1 }
 0x21c   :  { %v206_v48 = vmax.f32 %v201_v45, 0.0 }
 0x21d   :  { %v203_v50 = vpop.f32.mrf.mxu1 }
 0x21e   :  { %v208_v51 = vpack.c.bf16 %v206_v48, %v206_v48 }
 0x21f   :  { %v302_v52 = vpop.f32.mrf.mxu1 }
 0x220   :  { %v224_v53 = vand.u32 %v222_v49, %v208_v51 }
 0x222   :  { %304 = vmatpush3.bf16.msra.mxu0 %v224_v53 }
 0x225   :  { %306 = vmatmul.mubr.msk.bf16.vlgmr.msra.gmra.mxu0 %vm215_vm8, %v207_v54 }
 0x2e5   :  { %v260_v56 = vpop.f32.mrf.mxu0 }
 0x2e6   :  { %v261_v57 = vadd.f32 %v260_v56, %v213_v55 }
 0x2e7   :  { %v307_v58 = vpop.f32.mrf.mxu0 }
 0x2e8   :  { %266 = vst [vmem:[#allocation2] sm:$0x7] %v261_v57 }
 0x2e9   :  { %v263_v59 = vpop.f32.mrf.mxu0 }
 0x2ea   :  { %328 = shalt.err (!%p325_p4)
}
 0x2eb   :  { %276 = dma.vmem_to_hbm [thread:$0]  %s274_s19, 64, %s466_s7, [#allocation3]   ;;  %v308_v60 = vpop.f32.mrf.mxu0 }
 0x2ec   :  { %337 = dma.done.wait [#allocation3], 64  }
 0x2ed   :  { %338 = vsyncadd [#allocation3], 4294967232 }
 0x2ee   :  { %280 = vsyncpa [#allocation3], 1 }

</bundles_post_ra>
